<compile_context>
chip_gen: v7x
topology: tpu7x:2x2x1
jax: 0.10.0
libtpu: 0.0.40
codegen_flags: <defaults>
</compile_context>

<pallas_src>
import jax
import jax.numpy as jnp
from jax.experimental import pallas as pl
from jax.experimental.pallas import tpu as pltpu


def _qcritic_kernel(z_ref, s_ref, a_ref, w1s_ref, w1a_ref, b1_ref,
                    w2_ref, b2_ref, w3_ref, b3_ref, out_ref):
    """Fused 3-layer MLP head for option z (one batch tile per grid step)."""
    # Layer 1: split-K matmul == matmul on concat([states, actions]).
    # Activations cast to bf16 on the VPU; MXU accumulates in f32.
    s = s_ref[...].astype(jnp.bfloat16)
    a = a_ref[...].astype(jnp.bfloat16)
    h1 = jnp.dot(s, w1s_ref[...], preferred_element_type=jnp.float32)
    h1 = h1 + jnp.dot(a, w1a_ref[...], preferred_element_type=jnp.float32)
    h1 = jnp.maximum(h1 + b1_ref[...], 0.0)               # (TB, fc)  f32

    # Layer 2 (MXU, bf16 operands, f32 accumulator).
    h2 = jnp.dot(h1.astype(jnp.bfloat16), w2_ref[...],
                 preferred_element_type=jnp.float32)
    h2 = jnp.maximum(h2 + b2_ref[...], 0.0)                # (TB, fc)  f32

    # Layer 3: output width 1 -> VPU multiply + lane reduce; b3 from SMEM.
    v = jnp.sum(h2 * w3_ref[...], axis=-1, keepdims=True)  # (TB, 1)
    out_ref[...] = v + b3_ref[z_ref[0]]


_TB_MAX = 512   # batch-tile cap (>=512-row tiles hit ~85% of HBM roofline)


@jax.jit
def _op_q_critic_forward(params, states, actions, z_arr):
    """One jitted executable: no wrapper-side cast/concat/weight gather."""
    batch, state_dim = states.shape
    action_dim = actions.shape[1]
    fc_dim = params["w2"].shape[-1]

    # Batch tiling: a single full-batch tile when small, otherwise 512-row
    # tiles over a "parallel" grid axis (pad the batch up to a multiple).
    if batch > _TB_MAX:
        tb = _TB_MAX
        b_pad = pl.cdiv(batch, tb) * tb
        if b_pad != batch:
            states = jnp.pad(states, ((0, b_pad - batch), (0, 0)))
            actions = jnp.pad(actions, ((0, b_pad - batch), (0, 0)))
    else:
        tb, b_pad = batch, batch
    num_tiles = b_pad // tb

    # index_maps receive (grid_idx, *scalar_prefetch_refs).
    def batch_map(i, z_ref):          # batch-tiled tensors
        return (i, 0)

    def opt_map(i, z_ref):            # per-option stacked parameters
        return (z_ref[0], 0, 0)       # grid-invariant -> stays VMEM-resident

    sq = pl.Squeezed()
    grid_spec = pltpu.PrefetchScalarGridSpec(
        num_scalar_prefetch=1,
        grid=(num_tiles,),
        in_specs=[
            pl.BlockSpec((tb, state_dim), batch_map),            # states
            pl.BlockSpec((tb, action_dim), batch_map),           # actions
            pl.BlockSpec((sq, state_dim, fc_dim), opt_map),      # W1_s[z]
            pl.BlockSpec((sq, action_dim, fc_dim), opt_map),     # W1_a[z]
            pl.BlockSpec((sq, 1, fc_dim), opt_map),              # b1[z]
            pl.BlockSpec((sq, fc_dim, fc_dim), opt_map),         # W2[z]
            pl.BlockSpec((sq, 1, fc_dim), opt_map),              # b2[z]
            pl.BlockSpec((sq, 1, fc_dim), opt_map),              # W3[z] (row)
            pl.BlockSpec(memory_space=pltpu.MemorySpace.SMEM),   # b3 (all z)
        ],
        out_specs=pl.BlockSpec((tb, 1), batch_map),
    )

    out = pl.pallas_call(
        _qcritic_kernel,
        out_shape=jax.ShapeDtypeStruct((b_pad, 1), jnp.float32),
        grid_spec=grid_spec,
        compiler_params=pltpu.CompilerParams(
            dimension_semantics=("parallel",)),
    )(z_arr, states, actions,
      params["w1s"], params["w1a"], params["b1"], params["w2"], params["b2"],
      params["w3"], params["b3"])
    return out[:batch]


class OPQCriticPallas:
    """JAX/Pallas port of OP_Q_Critic (num_options independent MLP heads)."""

    def __init__(self, input_dim: int, fc_dim: int, num_options: int,
                 key: jax.Array):
        self.input_dim = input_dim
        self.fc_dim = fc_dim
        self.num_options = num_options

        def linear_init(k, fan_in, fan_out):
            # PyTorch nn.Linear default: U(-1/sqrt(fan_in), 1/sqrt(fan_in))
            bound = 1.0 / float(fan_in) ** 0.5
            kw, kb = jax.random.split(k)
            w = jax.random.uniform(kw, (fan_in, fan_out), jnp.float32,
                                   -bound, bound)
            b = jax.random.uniform(kb, (1, fan_out), jnp.float32,
                                   -bound, bound)
            return w, b

        w1s, b1s, w2s, b2s, w3s, b3s = [], [], [], [], [], []
        for ko in jax.random.split(key, num_options):
            k1, k2, k3 = jax.random.split(ko, 3)
            w1, b1 = linear_init(k1, input_dim, fc_dim)
            w2, b2 = linear_init(k2, fc_dim, fc_dim)
            w3, b3 = linear_init(k3, fc_dim, 1)
            w1s.append(w1); b1s.append(b1)
            w2s.append(w2); b2s.append(b2)
            w3s.append(w3.T); b3s.append(b3.reshape(()))  # W3 as (1, fc) row

        # Stacked per-option parameters (leading axis = option index z).
        # W1 stays un-split here (the state/action split is only known when
        # the first batch arrives); the split + bf16 cast is done once below.
        self._w1_full = jnp.stack(w1s)   # (O, input_dim, fc) f32
        self._b1 = jnp.stack(b1s)        # (O, 1, fc) f32
        self._w2 = jnp.stack(w2s)        # (O, fc, fc) f32
        self._b2 = jnp.stack(b2s)        # (O, 1, fc) f32
        self._w3 = jnp.stack(w3s)        # (O, 1, fc) f32 (row-vector form)
        self._b3 = jnp.stack(b3s)        # (O,) f32       (read from SMEM)
        self._state_dim = None
        self.params = None

    def _build_params(self, state_dim: int):
        """One-time W1 split into tile-aligned state/action halves + bf16."""
        if self._state_dim != state_dim:
            self.params = {
                # MXU operands in bf16 (f32 accumulation inside the kernel).
                "w1s": self._w1_full[:, :state_dim, :].astype(jnp.bfloat16),
                "w1a": self._w1_full[:, state_dim:, :].astype(jnp.bfloat16),
                "w2": self._w2.astype(jnp.bfloat16),
                # VPU epilogue stays f32 (bias adds / ReLU / final reduce).
                "b1": self._b1,
                "b2": self._b2,
                "w3": self._w3,
                "b3": self._b3,
            }
            self._state_dim = state_dim
        return self.params

    def __call__(self, states: jax.Array, actions: jax.Array, z):
        params = self._build_params(states.shape[-1])
        z_arr = jnp.clip(jnp.asarray(z, dtype=jnp.int32), 0,
                         self.num_options - 1).reshape((1,))
        return _op_q_critic_forward(params, states, actions, z_arr)


def _reference_forward(critic: OPQCriticPallas, states, actions, z: int):
    """Pure-JAX reference mirroring the kernel numerics (bf16 MXU, f32 acc)."""
    p = critic.params
    x = jnp.concatenate([states, actions], axis=-1).astype(jnp.bfloat16)
    w1 = jnp.concatenate([p["w1s"][z], p["w1a"][z]], axis=0)
    h1 = jnp.maximum(
        jnp.dot(x, w1, preferred_element_type=jnp.float32) + p["b1"][z], 0.0)
    h2 = jnp.maximum(
        jnp.dot(h1.astype(jnp.bfloat16), p["w2"][z],
                preferred_element_type=jnp.float32) + p["b2"][z], 0.0)
    return jnp.sum(h2 * p["w3"][z], axis=-1, keepdims=True) + p["b3"][z]


if __name__ == "__main__":
    key = jax.random.PRNGKey(0)
    k_params, k_s, k_a = jax.random.split(key, 3)

    batch = 2
    state_dim = 12
    action_dim = 4
    input_dim = state_dim + action_dim   # MLP input = concat(states, actions)
    fc_dim = 32
    num_options = 3

    critic = OPQCriticPallas(input_dim, fc_dim, num_options, k_params)

    states = jax.random.normal(k_s, (batch, state_dim), jnp.float32)
    actions = jax.random.normal(k_a, (batch, action_dim), jnp.float32)

    # Run two different options; z is a traced scalar-prefetch arg, so the
    # second call reuses the same compiled executable.
    for z in (1, 2):
        value = jax.block_until_ready(critic(states, actions, z))
        ref = _reference_forward(critic, states, actions, z)
        assert value.shape == (batch, 1), value.shape
        assert jnp.allclose(value, ref, atol=1e-2, rtol=1e-2), (z, value, ref)

    print("KERNEL_OK")
</pallas_src>

<mosaic_0001>
module attributes {stable_mosaic.version = 11 : i64} {
  func.func @_qcritic_kernel(%arg0: i32, %arg1: memref<1xi32, #tpu.memory_space<smem>>, %arg2: memref<2x12xf32, #tpu.memory_space<vmem>>, %arg3: memref<2x4xf32, #tpu.memory_space<vmem>>, %arg4: memref<1x12x32xbf16, #tpu.memory_space<vmem>>, %arg5: memref<1x4x32xbf16, #tpu.memory_space<vmem>>, %arg6: memref<1x1x32xf32, #tpu.memory_space<vmem>>, %arg7: memref<1x32x32xbf16, #tpu.memory_space<vmem>>, %arg8: memref<1x1x32xf32, #tpu.memory_space<vmem>>, %arg9: memref<1x1x32xf32, #tpu.memory_space<vmem>>, %arg10: memref<3xf32, #tpu.memory_space<smem>>, %arg11: memref<2x1xf32, #tpu.memory_space<vmem>>) attributes {dimension_semantics = [#tpu.dimension_semantics<parallel>], iteration_bounds = array<i64: 1>, scalar_prefetch = 1 : i64, scratch_operands = 0 : i64, tpu.core_type = #tpu.core_type<tc>, window_params = [{transform_indices = @transform_0, window_bounds = array<i64: 2, 12>}, {transform_indices = @transform_1, window_bounds = array<i64: 2, 4>}, {transform_indices = @transform_2, window_bounds = array<i64: 1, 12, 32>}, {transform_indices = @transform_3, window_bounds = array<i64: 1, 4, 32>}, {transform_indices = @transform_4, window_bounds = array<i64: 1, 1, 32>}, {transform_indices = @transform_5, window_bounds = array<i64: 1, 32, 32>}, {transform_indices = @transform_6, window_bounds = array<i64: 1, 1, 32>}, {transform_indices = @transform_7, window_bounds = array<i64: 1, 1, 32>}, {transform_indices = @transform_8, window_bounds = array<i64: 3>}, {transform_indices = @transform_9, window_bounds = array<i64: 2, 1>}]} {
    %c0 = arith.constant 0 : index
    %c0_0 = arith.constant 0 : index
    %0 = vector.load %arg2[%c0, %c0_0] : memref<2x12xf32, #tpu.memory_space<vmem>>, vector<2x12xf32>
    %1 = arith.truncf %0 : vector<2x12xf32> to vector<2x12xbf16>
    %c0_1 = arith.constant 0 : index
    %c0_2 = arith.constant 0 : index
    %2 = vector.load %arg3[%c0_1, %c0_2] : memref<2x4xf32, #tpu.memory_space<vmem>>, vector<2x4xf32>
    %3 = arith.truncf %2 : vector<2x4xf32> to vector<2x4xbf16>
    %c0_3 = arith.constant 0 : index
    %c0_4 = arith.constant 0 : index
    %c0_5 = arith.constant 0 : index
    %4 = vector.load %arg4[%c0_3, %c0_4, %c0_5] : memref<1x12x32xbf16, #tpu.memory_space<vmem>>, vector<1x12x32xbf16>
    %5 = vector.shape_cast %4 : vector<1x12x32xbf16> to vector<12x32xbf16>
    %cst = arith.constant dense<0.000000e+00> : vector<2x32xf32>
    %6 = tpu.matmul %1, %5, %cst {dimension_numbers = #tpu.dot_dimension_numbers<[1], [0], [0], [1], [0, 0, 1, 1], [], []>} : vector<2x12xbf16>, vector<12x32xbf16>, vector<2x32xf32> -> vector<2x32xf32>
    %c0_6 = arith.constant 0 : index
    %c0_7 = arith.constant 0 : index
    %c0_8 = arith.constant 0 : index
    %7 = vector.load %arg5[%c0_6, %c0_7, %c0_8] : memref<1x4x32xbf16, #tpu.memory_space<vmem>>, vector<1x4x32xbf16>
    %8 = vector.shape_cast %7 : vector<1x4x32xbf16> to vector<4x32xbf16>
    %cst_9 = arith.constant dense<0.000000e+00> : vector<2x32xf32>
    %9 = tpu.matmul %3, %8, %cst_9 {dimension_numbers = #tpu.dot_dimension_numbers<[1], [0], [0], [1], [0, 0, 1, 1], [], []>} : vector<2x4xbf16>, vector<4x32xbf16>, vector<2x32xf32> -> vector<2x32xf32>
    %10 = arith.addf %6, %9 : vector<2x32xf32>
    %c0_10 = arith.constant 0 : index
    %c0_11 = arith.constant 0 : index
    %c0_12 = arith.constant 0 : index
    %11 = vector.load %arg6[%c0_10, %c0_11, %c0_12] : memref<1x1x32xf32, #tpu.memory_space<vmem>>, vector<1x1x32xf32>
    %12 = vector.shape_cast %11 : vector<1x1x32xf32> to vector<1x32xf32>
    %13 = vector.broadcast %12 : vector<1x32xf32> to vector<2x32xf32>
    %14 = arith.addf %10, %13 : vector<2x32xf32>
    %cst_13 = arith.constant 0.000000e+00 : f32
    %15 = vector.broadcast %cst_13 : f32 to vector<2x32xf32>
    %16 = arith.maximumf %14, %15 : vector<2x32xf32>
    %17 = arith.truncf %16 : vector<2x32xf32> to vector<2x32xbf16>
    %c0_14 = arith.constant 0 : index
    %c0_15 = arith.constant 0 : index
    %c0_16 = arith.constant 0 : index
    %18 = vector.load %arg7[%c0_14, %c0_15, %c0_16] : memref<1x32x32xbf16, #tpu.memory_space<vmem>>, vector<1x32x32xbf16>
    %19 = vector.shape_cast %18 : vector<1x32x32xbf16> to vector<32x32xbf16>
    %cst_17 = arith.constant dense<0.000000e+00> : vector<2x32xf32>
    %20 = tpu.matmul %17, %19, %cst_17 {dimension_numbers = #tpu.dot_dimension_numbers<[1], [0], [0], [1], [0, 0, 1, 1], [], []>} : vector<2x32xbf16>, vector<32x32xbf16>, vector<2x32xf32> -> vector<2x32xf32>
    %c0_18 = arith.constant 0 : index
    %c0_19 = arith.constant 0 : index
    %c0_20 = arith.constant 0 : index
    %21 = vector.load %arg8[%c0_18, %c0_19, %c0_20] : memref<1x1x32xf32, #tpu.memory_space<vmem>>, vector<1x1x32xf32>
    %22 = vector.shape_cast %21 : vector<1x1x32xf32> to vector<1x32xf32>
    %23 = vector.broadcast %22 : vector<1x32xf32> to vector<2x32xf32>
    %24 = arith.addf %20, %23 : vector<2x32xf32>
    %cst_21 = arith.constant 0.000000e+00 : f32
    %25 = vector.broadcast %cst_21 : f32 to vector<2x32xf32>
    %26 = arith.maximumf %24, %25 : vector<2x32xf32>
    %c0_22 = arith.constant 0 : index
    %c0_23 = arith.constant 0 : index
    %c0_24 = arith.constant 0 : index
    %27 = vector.load %arg9[%c0_22, %c0_23, %c0_24] : memref<1x1x32xf32, #tpu.memory_space<vmem>>, vector<1x1x32xf32>
    %28 = vector.shape_cast %27 : vector<1x1x32xf32> to vector<1x32xf32>
    %29 = vector.broadcast %28 : vector<1x32xf32> to vector<2x32xf32>
    %30 = arith.mulf %26, %29 : vector<2x32xf32>
    %cst_25 = arith.constant dense<0.000000e+00> : vector<2xf32>
    %31 = vector.multi_reduction <add>, %30, %cst_25 [1] : vector<2x32xf32> to vector<2xf32>
    %32 = vector.shape_cast %31 : vector<2xf32> to vector<2x1xf32>
    %c0_26 = arith.constant 0 : index
    %33 = memref.load %arg1[%c0_26] : memref<1xi32, #tpu.memory_space<smem>>
    %34 = arith.index_cast %33 : i32 to index
    %35 = memref.load %arg10[%34] : memref<3xf32, #tpu.memory_space<smem>>
    %36 = vector.broadcast %35 : f32 to vector<2x1xf32>
    %37 = arith.addf %32, %36 : vector<2x1xf32>
    %c0_27 = arith.constant 0 : index
    %c0_28 = arith.constant 0 : index
    %38 = vector.load %arg11[%c0_27, %c0_28] : memref<2x1xf32, #tpu.memory_space<vmem>>, vector<2x1xf32>
    tpu.vector_store %arg11[%c0_27, %c0_28], %37 {strides = array<i32>} : memref<2x1xf32, #tpu.memory_space<vmem>>, vector<2x1xf32>,
    return
  }
  func.func @transform_0(%arg0: i32, %arg1: memref<1xi32, #tpu.memory_space<smem>>) -> (i32, i32) {
    %c0_i32 = arith.constant 0 : i32
    %c0_i32_0 = arith.constant 0 : i32
    return %arg0, %c0_i32 : i32, i32
  }
  func.func @transform_1(%arg0: i32, %arg1: memref<1xi32, #tpu.memory_space<smem>>) -> (i32, i32) {
    %c0_i32 = arith.constant 0 : i32
    %c0_i32_0 = arith.constant 0 : i32
    return %arg0, %c0_i32 : i32, i32
  }
  func.func @transform_2(%arg0: i32, %arg1: memref<1xi32, #tpu.memory_space<smem>>) -> (i32, i32, i32) {
    %c0 = arith.constant 0 : index
    %0 = memref.load %arg1[%c0] : memref<1xi32, #tpu.memory_space<smem>>
    %c0_i32 = arith.constant 0 : i32
    %c0_i32_0 = arith.constant 0 : i32
    %c0_i32_1 = arith.constant 0 : i32
    return %0, %c0_i32, %c0_i32_0 : i32, i32, i32
  }
  func.func @transform_3(%arg0: i32, %arg1: memref<1xi32, #tpu.memory_space<smem>>) -> (i32, i32, i32) {
    %c0 = arith.constant 0 : index
    %0 = memref.load %arg1[%c0] : memref<1xi32, #tpu.memory_space<smem>>
    %c0_i32 = arith.constant 0 : i32
    %c0_i32_0 = arith.constant 0 : i32
    %c0_i32_1 = arith.constant 0 : i32
    return %0, %c0_i32, %c0_i32_0 : i32, i32, i32
  }
  func.func @transform_4(%arg0: i32, %arg1: memref<1xi32, #tpu.memory_space<smem>>) -> (i32, i32, i32) {
    %c0 = arith.constant 0 : index
    %0 = memref.load %arg1[%c0] : memref<1xi32, #tpu.memory_space<smem>>
    %c0_i32 = arith.constant 0 : i32
    %c0_i32_0 = arith.constant 0 : i32
    %c0_i32_1 = arith.constant 0 : i32
    return %0, %c0_i32, %c0_i32_0 : i32, i32, i32
  }
  func.func @transform_5(%arg0: i32, %arg1: memref<1xi32, #tpu.memory_space<smem>>) -> (i32, i32, i32) {
    %c0 = arith.constant 0 : index
    %0 = memref.load %arg1[%c0] : memref<1xi32, #tpu.memory_space<smem>>
    %c0_i32 = arith.constant 0 : i32
    %c0_i32_0 = arith.constant 0 : i32
    %c0_i32_1 = arith.constant 0 : i32
    return %0, %c0_i32, %c0_i32_0 : i32, i32, i32
  }
  func.func @transform_6(%arg0: i32, %arg1: memref<1xi32, #tpu.memory_space<smem>>) -> (i32, i32, i32) {
    %c0 = arith.constant 0 : index
    %0 = memref.load %arg1[%c0] : memref<1xi32, #tpu.memory_space<smem>>
    %c0_i32 = arith.constant 0 : i32
    %c0_i32_0 = arith.constant 0 : i32
    %c0_i32_1 = arith.constant 0 : i32
    return %0, %c0_i32, %c0_i32_0 : i32, i32, i32
  }
  func.func @transform_7(%arg0: i32, %arg1: memref<1xi32, #tpu.memory_space<smem>>) -> (i32, i32, i32) {
    %c0 = arith.constant 0 : index
    %0 = memref.load %arg1[%c0] : memref<1xi32, #tpu.memory_space<smem>>
    %c0_i32 = arith.constant 0 : i32
    %c0_i32_0 = arith.constant 0 : i32
    %c0_i32_1 = arith.constant 0 : i32
    return %0, %c0_i32, %c0_i32_0 : i32, i32, i32
  }
  func.func @transform_8(%arg0: i32, %arg1: memref<1xi32, #tpu.memory_space<smem>>) -> i32 {
    %c0_i32 = arith.constant 0 : i32
    %c0_i32_0 = arith.constant 0 : i32
    return %c0_i32 : i32
  }
  func.func @transform_9(%arg0: i32, %arg1: memref<1xi32, #tpu.memory_space<smem>>) -> (i32, i32) {
    %c0_i32 = arith.constant 0 : i32
    %c0_i32_0 = arith.constant 0 : i32
    return %arg0, %c0_i32 : i32, i32
  }
}

</mosaic_0001>

<bundles_post_ra>
// kernel: _op_q_critic_forward.1
= control target key start
LH: loop header
LB: loop body
LE: loop exit
PB: predicated region body
PF: predicated region fallthrough
CT: control target
= control target key end

     0   :  { %16 = vsyncpa [#allocation5], 0  ;;  %s662_s0 = inlined_call_operand.<no memory space> [shape: s32[1], index: 0, kind: input, shape index: {}]   ;;  %s663_s1 = inlined_call_operand.vmem [shape: f32[2,12], index: 1, kind: input, shape index: {}]   ;;  %s664_s2 = inlined_call_operand.vmem [shape: f32[2,4], index: 2, kind: input, shape index: {}]   ;;  %s665_s3 = inlined_call_operand.hbm [shape: bf16[3,12,32], index: 3, kind: input, shape index: {}]   ;;  %s666_s4 = inlined_call_operand.vmem [shape: bf16[3,4,32], index: 4, kind: input, shape index: {}]   ;;  %s667_s5 = inlined_call_operand.vmem [shape: f32[3,1,32], index: 5, kind: input, shape index: {}]   ;;  %s668_s6 = inlined_call_operand.hbm [shape: bf16[3,32,32], index: 6, kind: input, shape index: {}]   ;;  %s669_s7 = inlined_call_operand.hbm [shape: f32[3,1,32], index: 7, kind: input, shape index: {}]   ;;  %s670_s8 = inlined_call_operand.vmem [shape: f32[3,1,32], index: 8, kind: input, shape index: {}]   ;;  %s671_s9 = inlined_call_operand.hbm [shape: f32[3], index: 9, kind: input, shape index: {}]   ;;  %s672_s10 = inlined_call_operand.vmem [shape: f32[2,1], index: 10, kind: output, shape index: {}]  }
   0x1   :  { %17 = vsyncpa [#allocation8], 0 }
   0x2   :  { %18 = vsyncpa [#allocation6], 0  ;;  %s389_s15 = sshll.u32 %s662_s0, 8  ;;  %s516_s19 = smov [#allocation7]  }
   0x3   :  { %s62_s18 = scalar_lea.hbm %s668_s6, %s389_s15  ;;  %s63_s20 = sshll.u32 %s516_s19, 4  ;;  %s64_s20 = int_to_ptr.vmem [resolvable:$true] %s63_s20 }
   0x4   :  { %s388_s23 = sshll.u32 %s662_s0, 7  ;;  %s428_s24 = scalar_lea.hbm %s62_s18, 256 }
   0x5   :  { %p429_p0 = scmp.ne.s32.totalorder %s62_s18, %s428_s24  ;;  %s430_s27 = scalar_lea.hbm %s668_s6, 768 }
   0x6   :  { %p431_p1 = scmp.lt.u32.totalorder %s62_s18, %s668_s6  ;;  %p432_p2 = scmp.lt.u32.totalorder %s430_s27, %s428_s24 }
   0x7   :  { %p434_p4 = scmp.lt.u32.totalorder %s428_s24, %s62_s18 }
   0x8   :  { %p433_p3 = por %p432_p2, %p431_p1 }
   0xa   :  { %p435_p5 = por %p434_p4, %p433_p3 }
   0xc   :  { %p436_p6 = pnand %p435_p5, %p429_p0 }
   0xe   :  { %439 = shalt.err (!%p436_p6)
}
   0xf   :  { %s440_s30 = scalar_lea.vmem %s64_s20, 256  ;;  %p445_p8 = scmp.lt.s32.totalorder %s64_s20, %s64_s20 }
  0x10   :  { %p441_p7 = scmp.ne.s32.totalorder %s64_s20, %s440_s30  ;;  %p446_p9 = scmp.lt.s32.totalorder %s440_s30, %s440_s30 }
  0x12   :  { %p447_p10 = por %p446_p9, %p445_p8 }
  0x14   :  { %p448_p11 = pnand %p447_p10, %p441_p7 }
  0x16   :  { %451 = shalt.err (!%p448_p11)
}
  0x17   :  { %s517_s11 = smov 64   ;;  %s518_s12 = smov 4  }
  0x18   :  { %69 = dma.hbm_to_vmem [thread:$0]  %s62_s18, 256, %s64_s20, [#allocation8], %s517_s11, %s517_s11, %s518_s12  }
  0x19   :  { %s31_s6 = scalar_lea.hbm %s665_s3, %s388_s23  ;;  %s519_s15 = smov [#allocation4]  }
  0x1a   :  { %s32_s16 = sshll.u32 %s519_s15, 4  ;;  %s377_s21 = sshll.u32 %s662_s0, 4  ;;  %s33_s16 = int_to_ptr.vmem [resolvable:$true] %s32_s16 }
  0x1b   :  { %s452_s22 = scalar_lea.hbm %s31_s6, 128  ;;  %s454_s26 = scalar_lea.hbm %s665_s3, 384 }
  0x1c   :  { %p453_p12 = scmp.ne.s32.totalorder %s31_s6, %s452_s22  ;;  %p455_p13 = scmp.lt.u32.totalorder %s31_s6, %s665_s3 }
  0x1d   :  { %p456_p0 = scmp.lt.u32.totalorder %s454_s26, %s452_s22  ;;  %p458_p2 = scmp.lt.u32.totalorder %s452_s22, %s31_s6 }
  0x1f   :  { %p457_p1 = por %p456_p0, %p455_p13 }
  0x21   :  { %p459_p3 = por %p458_p2, %p457_p1 }
  0x23   :  { %p460_p4 = pnand %p459_p3, %p453_p12 }
  0x25   :  { %463 = shalt.err (!%p460_p4)
}
  0x26   :  { %s464_s18 = scalar_lea.vmem %s33_s16, 128  ;;  %p469_p6 = scmp.lt.s32.totalorder %s33_s16, %s33_s16 }
  0x27   :  { %p465_p5 = scmp.ne.s32.totalorder %s33_s16, %s464_s18  ;;  %p470_p7 = scmp.lt.s32.totalorder %s464_s18, %s464_s18 }
  0x29   :  { %p471_p8 = por %p470_p7, %p469_p6 }
  0x2b   :  { %p472_p9 = pnand %p471_p8, %p465_p5 }
  0x2d   :  { %475 = shalt.err (!%p472_p9)
}
  0x2e   :  { %38 = dma.hbm_to_vmem [thread:$0]  %s31_s6, 128, %s33_s16, [#allocation5], %s517_s11, %s517_s11, %s518_s12  }
  0x2f   :  { %s77_s29 = scalar_lea.hbm %s669_s7, %s377_s21  ;;  %s520_s30 = smov [#allocation9]  }
  0x30   :  { %s79_s3 = sshll.u32 %s520_s30, 4  ;;  %s476_s13 = scalar_lea.hbm %s77_s29, 16  ;;  %s80_s3 = int_to_ptr.vmem [resolvable:$true] %s79_s3 }
  0x31   :  { %p477_p10 = scmp.ne.s32.totalorder %s77_s29, %s476_s13  ;;  %s478_s17 = scalar_lea.hbm %s669_s7, 48 }
  0x32   :  { %p479_p11 = scmp.lt.u32.totalorder %s77_s29, %s669_s7  ;;  %p480_p12 = scmp.lt.u32.totalorder %s478_s17, %s476_s13 }
  0x33   :  { %p482_p0 = scmp.lt.u32.totalorder %s476_s13, %s77_s29 }
  0x34   :  { %p481_p13 = por %p480_p12, %p479_p11 }
  0x36   :  { %p483_p1 = por %p482_p0, %p481_p13 }
  0x38   :  { %p484_p2 = pnand %p483_p1, %p477_p10 }
  0x3a   :  { %487 = shalt.err (!%p484_p2)
}
  0x3b   :  { %s488_s11 = scalar_lea.vmem %s80_s3, 16  ;;  %s492_s12 = scalar_lea.vmem %s80_s3, 32 }
  0x3c   :  { %p489_p3 = scmp.ne.s32.totalorder %s80_s3, %s488_s11  ;;  %p493_p4 = scmp.lt.s32.totalorder %s80_s3, %s80_s3 }
  0x3d   :  { %p494_p5 = scmp.lt.s32.totalorder %s492_s12, %s488_s11 }
  0x3f   :  { %p495_p6 = por %p494_p5, %p493_p4 }
  0x41   :  { %p496_p7 = pnand %p495_p6, %p489_p3 }
  0x43   :  { %499 = shalt.err (!%p496_p7)
}
  0x44   :  { %82 = dma.hbm_to_vmem [thread:$0]  %s77_s29, 16, %s80_s3, [#allocation8]  }
  0x45   :  { %s500_s21 = scalar_lea.hbm %s671_s9, 16 }
  0x46   :  { %p501_p8 = scmp.ne.s32.totalorder %s671_s9, %s500_s21  ;;  %p504_p9 = scmp.lt.u32.totalorder %s500_s21, %s671_s9 }
  0x48   :  { %p506_p10 = pnand %p504_p9, %p501_p8 }
  0x4a   :  { %509 = shalt.err (!%p506_p10)
}
  0x4b   :  { %s521_s27 = smov [#allocation10]  }
  0x4c   :  { %97 = dma.hbm_to_smem %s671_s9, 16, %s521_s27, [#allocation6]  }
  0x4d   :  { %510 = dma.done.wait [#allocation5], 128  }
  0x4e   :  { %511 = vsyncadd [#allocation5], 4294967168 }
  0x4f   :  { %512 = dma.done.wait [#allocation8], 272  }
  0x50   :  { %513 = vsyncadd [#allocation8], 4294967024 }
  0x51   :  { %514 = dma.done.wait [#allocation6], 16  }
  0x52   :  { %515 = vsyncadd [#allocation6], 4294967280 }
  0x53   :  { %110 = sfence }
  0x54   :  { %vm208_vm0 = vcmask 1045504   ;;  %v522_v0 = vmov 0.0   ;;  %v425_v1 = vld [vmem:[#allocation4] sm:$0x3f]   ;;  %p126_p11 = scmp.lt.s32.totalorder %s662_s0, 2  ;;  %vm523_vm1 = vmmov 0  }
  0x55   :  { %403 = vmatprep.subr.bf16.mxu1 %v522_v0  ;;  %397 = vmatprep.subr.bf16.mxu0 %v522_v0  ;;  %v144_v2 = vld [vmem:[%s663_s1] sm:$0x3]  ;;  %v210_v3 = vsel %vm208_vm0, %v425_v1, 0  ;;  %vm204_vm2 = vcmask 97280   ;;  %vm155_vm3 = vcmask 1041408   ;;  %vm151_vm4 = vcmask 31744  }
  0x56   :  { %405 = vmatprep.mubr.msk.bf16.mxu1 %vm523_vm1, %v522_v0  ;;  %399 = vmatprep.mubr.msk.bf16.mxu0 %vm523_vm1, %v522_v0  ;;  %s638_s13 = scalar_select %p126_p11, %s662_s0, 2  ;;  %v145_v4 = vpack.c.bf16 %v144_v2, %v144_v2  ;;  %v146_v5 = vld [vmem:[%s664_s2] sm:$0x3]  ;;  %v426_v9 = vld [vmem:[#allocation7] sm:$0xff]   ;;  %v427_v10 = vld [vmem:[#allocation7 + $0x8] sm:$0xff]   ;;  %vm285_vm5 = vcmask 261120  }
  0x57   :  { %404 = vmatpush3.bf16.msra.mxu1 %v210_v3  ;;  %v147_v8 = vpack.c.bf16 %v146_v5, %v146_v5  ;;  %v383_v24 = vld [vmem:[#allocation9] ss:$0 sm:$0xff]  ;;  %vm338_vm6 = vcmask 254976   ;;  %s343_s7 = sld [smem:[#allocation10 + %s662_s0]]  ;;  %vm346_vm7 = vcmask 1024  }
  0x58   :  { %s378_s14 = sshll.u32 %s638_s13, 1  ;;  %s134_s11 = scalar_lea.vmem %s667_s5, %s638_s13 }
  0x59   :  { %s129_s22 = scalar_lea.vmem %s666_s4, %s378_s14  ;;  %v382_v16 = vld [vmem:[%s134_s11] ss:$0 sm:$0xff]  ;;  %s141_s16 = scalar_lea.vmem %s670_s8, %s638_s13 }
  0x5a   :  { %v150_v6 = vld [vmem:[%s129_s22] sm:$0x3]  ;;  %406 = vmatmul.mubr.msk.bf16.vlgmr.msra.gmra.mrb[0].mxu1 %vm204_vm2, %v145_v4 }
  0x5b   :  { %v157_v7 = vsel %vm155_vm3, %v150_v6, 0  ;;  %v387_v29 = vld [vmem:[%s141_s16] ss:$0 sm:$0xff] }
  0x5c   :  { %398 = vmatpush3.bf16.msra.mxu0 %v157_v7 }
  0x5d   :  { %409 = vmatprep.subr.bf16.mxu0 %v522_v0  ;;  %v344_v34 = vstv %s343_s7 }
  0x5f   :  { %400 = vmatmul.mubr.msk.bf16.vlgmr.msra.gmra.mrb[0].mxu0 %vm151_vm4, %v147_v8 }
  0x60   :  { %413 = vmatprep.mubr.msk.bf16.mxu0 %vm523_vm1, %v522_v0  ;;  %410 = vmatpush3.bf16.msra.mxu0 %v426_v9 }
  0x61   :  { %411 = vmatprep.subr.bf16.mxu0 %v522_v0 }
  0x64   :  { %412 = vmatpush3.bf16.msra.mxu0 %v427_v10 }
 0x12d   :  { %v246_v11 = vpop.f32.mrb[0].mxu1 }
 0x12e   :  { %v407_v12 = vpop.f32.mrb[1].mxu1 }
 0x12f   :  { %v249_v13 = vpop.f32.mrb[2].mxu1 }
 0x130   :  { %v408_v14 = vpop.f32.mrb[3].mxu1 }
 0x132   :  { %v193_v15 = vpop.f32.mrb[0].mxu0 }
 0x133   :  { %v247_v17 = vadd.f32 %v246_v11, %v193_v15  ;;  %v401_v18 = vpop.f32.mrb[1].mxu0 }
 0x134   :  { %v196_v19 = vpop.f32.mrb[2].mxu0 }
 0x135   :  { %v259_v20 = vadd.f32 %v382_v16, %v247_v17  ;;  %v402_v21 = vpop.f32.mrb[3].mxu0 }
 0x137   :  { %v260_v22 = vmax.f32 %v259_v20, 0.0 }
 0x139   :  { %v261_v23 = vpack.c.bf16 %v260_v22, %v260_v22 }
 0x13b   :  { %414 = vmatmul.mubr.msk.bf16.vlgmr.msra.gmra.mrb[4].mxu0 %vm285_vm5, %v261_v23 }
 0x20e   :  { %v323_v25 = vpop.f32.mrb[4].mxu0 }
 0x20f   :  { %v324_v26 = vadd.f32 %v383_v24, %v323_v25  ;;  %v415_v27 = vpop.f32.mrb[5].mxu0 }
 0x210   :  { %v326_v28 = vpop.f32.mrb[6].mxu0 }
 0x211   :  { %v329_v30 = vmax.f32 %v324_v26, 0.0  ;;  %v416_v31 = vpop.f32.mrb[7].mxu0 }
 0x213   :  { %v337_v32 = vmul.f32 %v387_v29, %v329_v30 }
 0x215   :  { %v339_v33 = vsel %vm338_vm6, %v337_v32, 0.0 }
 0x216   :  { %340 = vadd.xlane.f32.xlu0 %v339_v33 }
 0x2a3   :  { %v341_v35 = vpop.xlane.xlu0 %340 }
 0x2a4   :  { %v345_v36 = vadd.f32 %v344_v34, %v341_v35 }
 0x2a6   :  { %347 = vst.msk [vmem:[%s672_s10] sm:$0x3] %vm346_vm7, %v345_v36 }
 0x2a7   :  { %352 = vsyncpa [#allocation5], 1 }
 0x2a8   :  { %353 = vsyncpa [#allocation8], 1 }
 0x2a9   :  { %354 = vsyncpa [#allocation6], 1 }

</bundles_post_ra>
